<compile_context>
chip_gen: v6e
topology: v6e:2x2x1
jax: 0.10.0
libtpu: 0.0.40
codegen_flags: <defaults>
</compile_context>

<pallas_src>
import jax
import jax.numpy as jnp
from jax import lax
from jax.experimental import pallas as pl
from jax.experimental.pallas import tpu as pltpu


def _make_kernel(offsets, L, G):
    """offsets: 9 static tap lane-offsets, L: lanes per step (Bt*H*W), G: guard width."""

    def kernel(x1_ref, x2_ref, w9a_ref, w9b_ref, aux_ref, o_ref, vg_ref):
        # x1_ref : (1, C1, L)   low1 for Bt images, flattened along lanes
        # x2_ref : (1, C2, L)   low2 likewise
        # w9a/w9b: (9, Ci)      fully folded per-tap weights (BN + conv1..5 folded)
        # aux_ref: (10, L)      rows 0..8: per-tap validity masks, row 9: bias map
        # o_ref  : (1, 1, L)    final conv5 output, flattened along lanes
        # vg_ref : (9, L+2G)    zero-guarded staging slab for the tap slices
        v = jnp.dot(w9a_ref[...], x1_ref[0], preferred_element_type=jnp.float32)
        v = v + jnp.dot(w9b_ref[...], x2_ref[0], preferred_element_type=jnp.float32)

        # Stage v with zero guards so every tap slice below is a static, in-range read.
        vg_ref[:, :G] = jnp.zeros((9, G), jnp.float32)
        vg_ref[:, G + L:] = jnp.zeros((9, G), jnp.float32)
        vg_ref[:, G:G + L] = v

        aux = aux_ref[...]
        acc = aux[9:10, :]                                   # precomputed bias map
        for k, off in enumerate(offsets):                    # 9 static lane-offset taps
            acc = acc + aux[k:k + 1, :] * vg_ref[k:k + 1, G + off:G + off + L]
        o_ref[0] = acc.astype(o_ref.dtype)

    return kernel


def aggregation_edge(high, low1, low2, low3, p, eps=1e-5):
    """Pallas implementation of Aggregation_edge.forward (inference-mode BatchNorm)."""
    del high, low3  # only .size() of `high` is read upstream; `low3` is unused.

    B, C1, H, W = low1.shape
    B2, C2, Hb, Wb = low2.shape
    assert (Hb, Wb) == (H, W) and B2 == B, "low1/low2 must share batch & spatial size"
    mid = p['conv1_w'].shape[0]
    assert p['conv4_w'].shape[:2] == (1, mid) and p['conv5_w'].shape[0] == 1, \
        "fully-folded kernel assumes out_fea == 1 (the module default)"

    hi = lax.Precision.HIGHEST

    # ---- fold BatchNorm (inference) into the 1x1 conv weights --------------------
    def fold(w, g, b, m, v):
        s = g / jnp.sqrt(v + eps)
        return s[:, None] * w[:, :, 0, 0], b - s * m

    W1, b1 = fold(p['conv1_w'], p['bn1_g'], p['bn1_b'], p['bn1_m'], p['bn1_v'])
    W2, b2 = fold(p['conv2_w'], p['bn2_g'], p['bn2_b'], p['bn2_m'], p['bn2_v'])
    W3, b3 = fold(p['conv3_w'], p['bn3_g'], p['bn3_b'], p['bn3_m'], p['bn3_v'])

    # ---- fold conv5 (1 output channel, shared conv4) into the branch weights -----
    w5 = p['conv5_w'][:, :, 0, 0].astype(jnp.float32)        # (1, 3)
    w50, w51, w52 = w5[0, 0], w5[0, 1], w5[0, 2]
    Wc1 = w50 * W1                                           # (mid, C1)  branch 1 <- low1
    Wc2 = w51 * W2 + w52 * W3                                # (mid, C2)  branches 2,3 <- low2
    beta_c = w50 * b1 + w51 * b2 + w52 * b3                  # (mid,)

    # ---- fold the 9 conv4 taps: one (9, Ci) weight per input ---------------------
    w4 = p['conv4_w'][0].astype(jnp.float32)                 # (mid, 3, 3)
    w9a = jnp.einsum('mhw,mc->hwc', w4, Wc1, precision=hi).reshape(9, C1)
    w9b = jnp.einsum('mhw,mc->hwc', w4, Wc2, precision=hi).reshape(9, C2)
    beta_taps = jnp.einsum('mhw,m->hw', w4, beta_c, precision=hi).reshape(9)
    const = (w50 + w51 + w52) * p['conv4_b'][0] + p['conv5_b'][0]

    # ---- per-tap validity masks + bias map (exact 'SAME'-padding boundary math) ---
    Nf = H * W
    masks, offsets = [], []
    for dh in (-1, 0, 1):
        for dw in (-1, 0, 1):
            m = jnp.zeros((H, W), jnp.float32).at[
                max(0, -dh):H - max(0, dh),
                max(0, -dw):W - max(0, dw)].set(1.0)
            masks.append(m.reshape(Nf))
            offsets.append(dh * W + dw)
    mask9 = jnp.stack(masks)                                         # (9, Nf)
    bmap = (mask9 * beta_taps[:, None]).sum(axis=0) + const          # (Nf,)

    # ---- batch chunking: >= 2 grid steps when B >= 2 (v7x has 2 TensorCores) ------
    bytes_per_img = 4 * Nf * (2 * (C1 + C2) + 16)                    # rough per-image VMEM cost
    bt_cap = max(1, (8 << 20) // max(bytes_per_img, 1))              # keep blocks well under VMEM
    Bt = max(1, min(B // 2, bt_cap))
    steps = -(-B // Bt)
    Bp = steps * Bt
    L = Bt * Nf                                                      # lanes per grid step
    G = W + 1                                                        # guard >= max |tap offset|

    aux = jnp.concatenate([mask9, bmap[None]], axis=0)               # (10, Nf)
    if Bt > 1:
        aux = jnp.tile(aux, (1, Bt))                                 # (10, L)

    # ---- inputs: reshapes only (no concat / no spatial-pad copies) ----------------
    x1 = low1.astype(jnp.float32).reshape(B, C1, Nf)
    x2 = low2.astype(jnp.float32).reshape(B, C2, Nf)
    if Bp != B:
        x1 = jnp.pad(x1, ((0, Bp - B), (0, 0), (0, 0)))
        x2 = jnp.pad(x2, ((0, Bp - B), (0, 0), (0, 0)))
    x1 = x1.reshape(steps, Bt, C1, Nf).transpose(0, 2, 1, 3).reshape(steps, C1, L)
    x2 = x2.reshape(steps, Bt, C2, Nf).transpose(0, 2, 1, 3).reshape(steps, C2, L)

    kernel = _make_kernel(tuple(offsets), L, G)

    out = pl.pallas_call(
        kernel,
        out_shape=jax.ShapeDtypeStruct((steps, 1, L), jnp.float32),
        grid_spec=pltpu.PrefetchScalarGridSpec(
            num_scalar_prefetch=0,
            grid=(steps,),
            in_specs=[
                pl.BlockSpec((1, C1, L), lambda i: (i, 0, 0)),       # low1 chunk
                pl.BlockSpec((1, C2, L), lambda i: (i, 0, 0)),       # low2 chunk
                pl.BlockSpec((9, C1), lambda i: (0, 0)),             # folded tap weights (low1)
                pl.BlockSpec((9, C2), lambda i: (0, 0)),             # folded tap weights (low2)
                pl.BlockSpec((10, L), lambda i: (0, 0)),             # tap masks + bias map
            ],
            out_specs=pl.BlockSpec((1, 1, L), lambda i: (i, 0, 0)),
            scratch_shapes=[pltpu.VMEM((9, L + 2 * G), jnp.float32)],
        ),
        compiler_params=pltpu.CompilerParams(
            dimension_semantics=("parallel",)),
    )(x1, x2, w9a, w9b, aux)

    # lanes -> (B, 1, H, W); pure reshapes
    out = out.reshape(Bp, Nf)[:B]
    return out.reshape(B, 1, H, W)


def _reference(high, low1, low2, low3, p, eps=1e-5):
    """Pure-JAX reference of the PyTorch forward (inference-mode BatchNorm)."""
    del high, low3

    def conv1x1(x, w):
        return jnp.einsum('oi,bihw->bohw', w[:, :, 0, 0], x,
                          precision=lax.Precision.HIGHEST)

    def bn(x, g, b, m, v):
        s = (g / jnp.sqrt(v + eps))[None, :, None, None]
        return (x - m[None, :, None, None]) * s + b[None, :, None, None]

    y1 = bn(conv1x1(low1, p['conv1_w']), p['bn1_g'], p['bn1_b'], p['bn1_m'], p['bn1_v'])
    y2 = bn(conv1x1(low2, p['conv2_w']), p['bn2_g'], p['bn2_b'], p['bn2_m'], p['bn2_v'])
    y3 = bn(conv1x1(low2, p['conv3_w']), p['bn3_g'], p['bn3_b'], p['bn3_m'], p['bn3_v'])

    def conv4(z):
        out = lax.conv_general_dilated(z, p['conv4_w'], (1, 1), 'SAME',
                                       dimension_numbers=('NCHW', 'OIHW', 'NCHW'),
                                       precision=lax.Precision.HIGHEST)
        return out + p['conv4_b'][None, :, None, None]

    cat = jnp.concatenate([conv4(y1), conv4(y2), conv4(y3)], axis=1)
    return conv1x1(cat, p['conv5_w']) + p['conv5_b'][None, :, None, None]


if __name__ == "__main__":
    B, H, W = 2, 16, 16
    in_fea = [32, 32, 32]
    mid, out_fea = 16, 1

    key = jax.random.PRNGKey(0)
    ks = jax.random.split(key, 21)

    def nrm(k, shape, scale=1.0):
        return scale * jax.random.normal(k, shape, dtype=jnp.float32)

    high = nrm(ks[0], (B, in_fea[0], H, W))
    low1 = nrm(ks[1], (B, in_fea[0], H, W))
    low2 = nrm(ks[2], (B, in_fea[1], H, W))
    low3 = nrm(ks[3], (B, in_fea[2], H, W))

    p = dict(
        conv1_w=nrm(ks[4], (mid, in_fea[0], 1, 1), 0.2),
        conv2_w=nrm(ks[5], (mid, in_fea[1], 1, 1), 0.2),
        conv3_w=nrm(ks[6], (mid, in_fea[2], 1, 1), 0.2),
        bn1_g=1.0 + 0.1 * nrm(ks[7], (mid,)),  bn1_b=0.1 * nrm(ks[8], (mid,)),
        bn1_m=0.1 * nrm(ks[9], (mid,)),        bn1_v=jnp.abs(nrm(ks[10], (mid,))) + 0.5,
        bn2_g=1.0 + 0.1 * nrm(ks[11], (mid,)), bn2_b=0.1 * nrm(ks[12], (mid,)),
        bn2_m=0.1 * nrm(ks[13], (mid,)),       bn2_v=jnp.abs(nrm(ks[14], (mid,))) + 0.5,
        bn3_g=1.0 + 0.1 * nrm(ks[15], (mid,)), bn3_b=0.1 * nrm(ks[16], (mid,)),
        bn3_m=0.1 * nrm(ks[17], (mid,)),       bn3_v=jnp.abs(nrm(ks[18], (mid,))) + 0.5,
        conv4_w=nrm(ks[19], (out_fea, mid, 3, 3), 0.2),
        conv4_b=jnp.array([0.05], jnp.float32),
        conv5_w=nrm(ks[20], (out_fea, out_fea * 3, 1, 1), 0.5),
        conv5_b=jnp.array([-0.02], jnp.float32),
    )

    y = aggregation_edge(high, low1, low2, low3, p)
    jax.block_until_ready(y)

    y_ref = _reference(high, low1, low2, low3, p)
    assert y.shape == (B, out_fea, H, W)
    assert jnp.allclose(y, y_ref, atol=2e-3, rtol=2e-3), \
        float(jnp.max(jnp.abs(y - y_ref)))

    print("KERNEL_OK")
</pallas_src>

<mosaic_0001>
module attributes {stable_mosaic.version = 11 : i64} {
  func.func @kernel(%arg0: i32, %arg1: memref<1x32x256xf32, #tpu.memory_space<vmem>>, %arg2: memref<1x32x256xf32, #tpu.memory_space<vmem>>, %arg3: memref<9x32xf32, #tpu.memory_space<vmem>>, %arg4: memref<9x32xf32, #tpu.memory_space<vmem>>, %arg5: memref<10x256xf32, #tpu.memory_space<vmem>>, %arg6: memref<1x1x256xf32, #tpu.memory_space<vmem>>, %arg7: memref<9x290xf32, #tpu.memory_space<vmem>>) attributes {dimension_semantics = [#tpu.dimension_semantics<parallel>], iteration_bounds = array<i64: 2>, scalar_prefetch = 0 : i64, scratch_operands = 1 : i64, tpu.core_type = #tpu.core_type<tc>, window_params = [{transform_indices = @transform_0, window_bounds = array<i64: 1, 32, 256>}, {transform_indices = @transform_1, window_bounds = array<i64: 1, 32, 256>}, {pipeline_mode = #tpu.pipeline_mode<synchronous>, transform_indices = @transform_2, window_bounds = array<i64: 9, 32>}, {pipeline_mode = #tpu.pipeline_mode<synchronous>, transform_indices = @transform_3, window_bounds = array<i64: 9, 32>}, {pipeline_mode = #tpu.pipeline_mode<synchronous>, transform_indices = @transform_4, window_bounds = array<i64: 10, 256>}, {transform_indices = @transform_5, window_bounds = array<i64: 1, 1, 256>}]} {
    %c0 = arith.constant 0 : index
    %c0_0 = arith.constant 0 : index
    %0 = vector.load %arg3[%c0, %c0_0] : memref<9x32xf32, #tpu.memory_space<vmem>>, vector<9x32xf32>
    %c0_1 = arith.constant 0 : index
    %c0_2 = arith.constant 0 : index
    %c0_3 = arith.constant 0 : index
    %1 = vector.load %arg1[%c0_1, %c0_2, %c0_3] : memref<1x32x256xf32, #tpu.memory_space<vmem>>, vector<1x32x256xf32>
    %2 = vector.shape_cast %1 : vector<1x32x256xf32> to vector<32x256xf32>
    %cst = arith.constant dense<0.000000e+00> : vector<9x256xf32>
    %3 = tpu.matmul %0, %2, %cst {dimension_numbers = #tpu.dot_dimension_numbers<[1], [0], [0], [1], [0, 0, 1, 1], [], []>} : vector<9x32xf32>, vector<32x256xf32>, vector<9x256xf32> -> vector<9x256xf32>
    %c0_4 = arith.constant 0 : index
    %c0_5 = arith.constant 0 : index
    %4 = vector.load %arg4[%c0_4, %c0_5] : memref<9x32xf32, #tpu.memory_space<vmem>>, vector<9x32xf32>
    %c0_6 = arith.constant 0 : index
    %c0_7 = arith.constant 0 : index
    %c0_8 = arith.constant 0 : index
    %5 = vector.load %arg2[%c0_6, %c0_7, %c0_8] : memref<1x32x256xf32, #tpu.memory_space<vmem>>, vector<1x32x256xf32>
    %6 = vector.shape_cast %5 : vector<1x32x256xf32> to vector<32x256xf32>
    %cst_9 = arith.constant dense<0.000000e+00> : vector<9x256xf32>
    %7 = tpu.matmul %4, %6, %cst_9 {dimension_numbers = #tpu.dot_dimension_numbers<[1], [0], [0], [1], [0, 0, 1, 1], [], []>} : vector<9x32xf32>, vector<32x256xf32>, vector<9x256xf32> -> vector<9x256xf32>
    %8 = arith.addf %3, %7 : vector<9x256xf32>
    %cst_10 = arith.constant 0.000000e+00 : f32
    %9 = vector.broadcast %cst_10 : f32 to vector<9x17xf32>
    %c0_11 = arith.constant 0 : index
    %c0_12 = arith.constant 0 : index
    %10 = vector.load %arg7[%c0_11, %c0_12] : memref<9x290xf32, #tpu.memory_space<vmem>>, vector<9x17xf32>
    tpu.vector_store %arg7[%c0_11, %c0_12], %9 {strides = array<i32>} : memref<9x290xf32, #tpu.memory_space<vmem>>, vector<9x17xf32>,
    %cst_13 = arith.constant 0.000000e+00 : f32
    %11 = vector.broadcast %cst_13 : f32 to vector<9x17xf32>
    %c0_14 = arith.constant 0 : index
    %c273 = arith.constant 273 : index
    %12 = vector.load %arg7[%c0_14, %c273] : memref<9x290xf32, #tpu.memory_space<vmem>>, vector<9x17xf32>
    tpu.vector_store %arg7[%c0_14, %c273], %11 {strides = array<i32>} : memref<9x290xf32, #tpu.memory_space<vmem>>, vector<9x17xf32>,
    %c0_15 = arith.constant 0 : index
    %c17 = arith.constant 17 : index
    %13 = vector.load %arg7[%c0_15, %c17] : memref<9x290xf32, #tpu.memory_space<vmem>>, vector<9x256xf32>
    tpu.vector_store %arg7[%c0_15, %c17], %8 {strides = array<i32>} : memref<9x290xf32, #tpu.memory_space<vmem>>, vector<9x256xf32>,
    %c0_16 = arith.constant 0 : index
    %c0_17 = arith.constant 0 : index
    %14 = vector.load %arg5[%c0_16, %c0_17] : memref<10x256xf32, #tpu.memory_space<vmem>>, vector<10x256xf32>
    %15 = vector.extract_strided_slice %14 {offsets = [9, 0], sizes = [1, 256], strides = [1, 1]} : vector<10x256xf32> to vector<1x256xf32>
    %16 = vector.extract_strided_slice %14 {offsets = [0, 0], sizes = [1, 256], strides = [1, 1]} : vector<10x256xf32> to vector<1x256xf32>
    %c0_18 = arith.constant 0 : index
    %c0_19 = arith.constant 0 : index
    %17 = vector.load %arg7[%c0_18, %c0_19] : memref<9x290xf32, #tpu.memory_space<vmem>>, vector<1x256xf32>
    %18 = arith.mulf %16, %17 : vector<1x256xf32>
    %19 = arith.addf %15, %18 : vector<1x256xf32>
    %20 = vector.extract_strided_slice %14 {offsets = [1, 0], sizes = [1, 256], strides = [1, 1]} : vector<10x256xf32> to vector<1x256xf32>
    %c1 = arith.constant 1 : index
    %c1_20 = arith.constant 1 : index
    %21 = vector.load %arg7[%c1, %c1_20] : memref<9x290xf32, #tpu.memory_space<vmem>>, vector<1x256xf32>
    %22 = arith.mulf %20, %21 : vector<1x256xf32>
    %23 = arith.addf %19, %22 : vector<1x256xf32>
    %24 = vector.extract_strided_slice %14 {offsets = [2, 0], sizes = [1, 256], strides = [1, 1]} : vector<10x256xf32> to vector<1x256xf32>
    %c2 = arith.constant 2 : index
    %c2_21 = arith.constant 2 : index
    %25 = vector.load %arg7[%c2, %c2_21] : memref<9x290xf32, #tpu.memory_space<vmem>>, vector<1x256xf32>
    %26 = arith.mulf %24, %25 : vector<1x256xf32>
    %27 = arith.addf %23, %26 : vector<1x256xf32>
    %28 = vector.extract_strided_slice %14 {offsets = [3, 0], sizes = [1, 256], strides = [1, 1]} : vector<10x256xf32> to vector<1x256xf32>
    %c3 = arith.constant 3 : index
    %c16 = arith.constant 16 : index
    %29 = vector.load %arg7[%c3, %c16] : memref<9x290xf32, #tpu.memory_space<vmem>>, vector<1x256xf32>
    %30 = arith.mulf %28, %29 : vector<1x256xf32>
    %31 = arith.addf %27, %30 : vector<1x256xf32>
    %32 = vector.extract_strided_slice %14 {offsets = [4, 0], sizes = [1, 256], strides = [1, 1]} : vector<10x256xf32> to vector<1x256xf32>
    %c4 = arith.constant 4 : index
    %c17_22 = arith.constant 17 : index
    %33 = vector.load %arg7[%c4, %c17_22] : memref<9x290xf32, #tpu.memory_space<vmem>>, vector<1x256xf32>
    %34 = arith.mulf %32, %33 : vector<1x256xf32>
    %35 = arith.addf %31, %34 : vector<1x256xf32>
    %36 = vector.extract_strided_slice %14 {offsets = [5, 0], sizes = [1, 256], strides = [1, 1]} : vector<10x256xf32> to vector<1x256xf32>
    %c5 = arith.constant 5 : index
    %c18 = arith.constant 18 : index
    %37 = vector.load %arg7[%c5, %c18] : memref<9x290xf32, #tpu.memory_space<vmem>>, vector<1x256xf32>
    %38 = arith.mulf %36, %37 : vector<1x256xf32>
    %39 = arith.addf %35, %38 : vector<1x256xf32>
    %40 = vector.extract_strided_slice %14 {offsets = [6, 0], sizes = [1, 256], strides = [1, 1]} : vector<10x256xf32> to vector<1x256xf32>
    %c6 = arith.constant 6 : index
    %c32 = arith.constant 32 : index
    %41 = vector.load %arg7[%c6, %c32] : memref<9x290xf32, #tpu.memory_space<vmem>>, vector<1x256xf32>
    %42 = arith.mulf %40, %41 : vector<1x256xf32>
    %43 = arith.addf %39, %42 : vector<1x256xf32>
    %44 = vector.extract_strided_slice %14 {offsets = [7, 0], sizes = [1, 256], strides = [1, 1]} : vector<10x256xf32> to vector<1x256xf32>
    %c7 = arith.constant 7 : index
    %c33 = arith.constant 33 : index
    %45 = vector.load %arg7[%c7, %c33] : memref<9x290xf32, #tpu.memory_space<vmem>>, vector<1x256xf32>
    %46 = arith.mulf %44, %45 : vector<1x256xf32>
    %47 = arith.addf %43, %46 : vector<1x256xf32>
    %48 = vector.extract_strided_slice %14 {offsets = [8, 0], sizes = [1, 256], strides = [1, 1]} : vector<10x256xf32> to vector<1x256xf32>
    %c8 = arith.constant 8 : index
    %c34 = arith.constant 34 : index
    %49 = vector.load %arg7[%c8, %c34] : memref<9x290xf32, #tpu.memory_space<vmem>>, vector<1x256xf32>
    %50 = arith.mulf %48, %49 : vector<1x256xf32>
    %51 = arith.addf %47, %50 : vector<1x256xf32>
    %c0_23 = arith.constant 0 : index
    %c0_24 = arith.constant 0 : index
    %c0_25 = arith.constant 0 : index
    %52 = vector.load %arg6[%c0_23, %c0_24, %c0_25] : memref<1x1x256xf32, #tpu.memory_space<vmem>>, vector<1x1x256xf32>
    %53 = vector.shape_cast %52 : vector<1x1x256xf32> to vector<1x256xf32>
    %54 = vector.shape_cast %51 : vector<1x256xf32> to vector<1x1x256xf32>
    tpu.vector_store %arg6[%c0_23, %c0_24, %c0_25], %54 {strides = array<i32>} : memref<1x1x256xf32, #tpu.memory_space<vmem>>, vector<1x1x256xf32>,
    return
  }
  func.func @transform_0(%arg0: i32) -> (i32, i32, i32) {
    %c0_i32 = arith.constant 0 : i32
    %c0_i32_0 = arith.constant 0 : i32
    %c0_i32_1 = arith.constant 0 : i32
    return %arg0, %c0_i32, %c0_i32_0 : i32, i32, i32
  }
  func.func @transform_1(%arg0: i32) -> (i32, i32, i32) {
    %c0_i32 = arith.constant 0 : i32
    %c0_i32_0 = arith.constant 0 : i32
    %c0_i32_1 = arith.constant 0 : i32
    return %arg0, %c0_i32, %c0_i32_0 : i32, i32, i32
  }
  func.func @transform_2(%arg0: i32) -> (i32, i32) {
    %c0_i32 = arith.constant 0 : i32
    %c0_i32_0 = arith.constant 0 : i32
    %c0_i32_1 = arith.constant 0 : i32
    return %c0_i32, %c0_i32_0 : i32, i32
  }
  func.func @transform_3(%arg0: i32) -> (i32, i32) {
    %c0_i32 = arith.constant 0 : i32
    %c0_i32_0 = arith.constant 0 : i32
    %c0_i32_1 = arith.constant 0 : i32
    return %c0_i32, %c0_i32_0 : i32, i32
  }
  func.func @transform_4(%arg0: i32) -> (i32, i32) {
    %c0_i32 = arith.constant 0 : i32
    %c0_i32_0 = arith.constant 0 : i32
    %c0_i32_1 = arith.constant 0 : i32
    return %c0_i32, %c0_i32_0 : i32, i32
  }
  func.func @transform_5(%arg0: i32) -> (i32, i32, i32) {
    %c0_i32 = arith.constant 0 : i32
    %c0_i32_0 = arith.constant 0 : i32
    %c0_i32_1 = arith.constant 0 : i32
    return %arg0, %c0_i32, %c0_i32_0 : i32, i32, i32
  }
}

</mosaic_0001>

<bundles_post_ra>
// kernel: tpu_custom_call.1
= control target key start
LH: loop header
LB: loop body
LE: loop exit
PB: predicated region body
PF: predicated region fallthrough
CT: control target
= control target key end

     0   :  { %s1743_s0 = inlined_call_operand.hbm [shape: f32[2,32,256], index: 0, kind: input, shape index: {}]   ;;  %s1744_s1 = inlined_call_operand.hbm [shape: f32[2,32,256], index: 1, kind: input, shape index: {}]   ;;  %s1745_s2 = inlined_call_operand.hbm [shape: f32[9,32], index: 2, kind: input, shape index: {}]   ;;  %s1746_s3 = inlined_call_operand.hbm [shape: f32[9,32], index: 3, kind: input, shape index: {}]   ;;  %s1747_s4 = inlined_call_operand.hbm [shape: f32[10,256], index: 4, kind: input, shape index: {}]   ;;  %s1748_s5 = inlined_call_operand.hbm [shape: f32[2,1,256], index: 5, kind: output, shape index: {}]  }
   0x1   :  { %1756 = sst [smem:[#allocation18_spill]] %s1743_s0 }
   0x2   :  { %1757 = sst [smem:[#allocation19_spill]] %s1745_s2 }
   0x3   :  { %1758 = sst [smem:[#allocation20_spill]] %s1746_s3 }
   0x4   :  { %1759 = sst [smem:[#allocation21_spill]] %s1747_s4 }
   0x5   :  { %10 = vsyncpa [#allocation4], 0 }
   0x6   :  { %12 = vsyncpa [#allocation4 + $0x1], 0 }
   0x7   :  { %13 = vsyncpa [#allocation7], 0 }
   0x8   :  { %15 = vsyncpa [#allocation7 + $0x1], 0 }
   0x9   :  { %16 = vsyncpa [#allocation10], 0 }
   0xa   :  { %17 = vsyncpa [#allocation5], 0 }
   0xb   :  { %19 = vsyncpa [#allocation5 + $0x1], 0  ;;  %s1408_s18 = smov 0   ;;  %s1410_s19 = smov 0  }
   0xc   :  { %s1412_s20 = smov 0   ;;  %s1414_s21 = smov 0  }
   0xd LB: > { %s1429_s22 = sadd.s32 4294967295, %s1355_s21   ;;  %s1017_s23 = sadd.s32 4294967294, %s1355_s21   ;;  %s1355_s21 = sphi %s1414_s21, %s1784_s21   ;;  %s1351_s20 = sphi %s1412_s20, %s1783_s20   ;;  %s1347_s19 = sphi %s1410_s19, %s1782_s19   ;;  %s1343_s18 = sphi %s1408_s18, %s1781_s18  }
   0xe   : > { %p45_p0 = scmp.ne.s32.totalorder %s1347_s19, %s1343_s18  ;;  %p1749_p1 = scmp.eq.s32.totalorder %s1429_s22, 0 }
   0xf   : > { %p164_p3 = scmp.eq.s32.totalorder %s1017_s23, 1  ;;  %p1018_p5 = scmp.ge.s32.totalorder %s1355_s21, 1 }
  0x10   : > { %p1438_p4 = por %p1749_p1, %p45_p0  ;;  %p171_p7 = scmp.lt.s32.totalorder %s1355_s21, 3 }
  0x11   : > { %p1443_p6 = por %p164_p3, %p45_p0  ;;  %s1357_s27 = smov [#allocation8]  }
  0x12   : > { %s1760_s24 = scalar_select %p1438_p4, 1, 0 }
  0x13   : > { %s1761_s25 = scalar_select %p1443_p6, 1, 0 }
  0x14   : > { %p1448_p8 = pnand %p1018_p5, %p171_p7  ;;  %s183_s28 = sshll.u32 %s1357_s27, 4  ;;  %s184_s28 = int_to_ptr.vmem [resolvable:$true] %s183_s28 }
  0x15   : > { %s1358_s30 = smov [#allocation9]   ;;  %s1359_s7 = smov [#allocation11]  }
  0x16   : > { %p1066_p9 = pneg %p1448_p8  ;;  %s196_s6 = sshll.u32 %s1358_s30, 4  ;;  %s197_s6 = int_to_ptr.vmem [resolvable:$true] %s196_s6 }
  0x17   : > { %s209_s8 = sshll.u32 %s1359_s7, 4  ;;  %s1156_s9 = scalar_lea.vmem %s184_s28, 256  ;;  %s210_s8 = int_to_ptr.vmem [resolvable:$true] %s209_s8 }
  0x18   : > { %p1457_p11 = pnand %p1066_p9, %p1749_p1  ;;  %p1157_p13 = scmp.ne.s32.totalorder %s184_s28, %s1156_s9 }
  0x19   : > { %p1164_p5 = scmp.lt.s32.totalorder %s184_s28, %s184_s28  ;;  %p1165_p7 = scmp.lt.s32.totalorder %s1156_s9, %s1156_s9 }
  0x1a   : > { %p1147_p12 = pneg %p1457_p11 }
  0x1b   : > { %p1166_p9 = por %p1165_p7, %p1164_p5 }
  0x1c   : > { %p1159_p0 = pnand %p1157_p13, %p1147_p12 }
  0x1e   : > { %p1160_p3 = pneg %p1159_p0 }
  0x20   : > { %p1167_p10 = pnand %p1166_p9, %p1160_p3 }
  0x22   : > { %1170 = shalt.err (!%p1167_p10)
}
  0x23   : > { %s1360_s10 = smov 128   ;;  %s1361_s11 = smov 8  }
  0x24   : > { %s1764_s2 = sld [smem:[#allocation19_spill]]  ;;  %s1182_s14 = scalar_lea.vmem %s197_s6, 256 }
  0x25   : > { %p1183_p1 = scmp.ne.s32.totalorder %s197_s6, %s1182_s14  ;;  %p1190_p2 = scmp.lt.s32.totalorder %s197_s6, %s197_s6 }
  0x26   : > { %p1191_p6 = scmp.lt.s32.totalorder %s1182_s14, %s1182_s14 }
  0x27   : > { %p1185_p13 = pnand %p1183_p1, %p1147_p12 }
  0x28   : > { %p1192_p5 = por %p1191_p6, %p1190_p2 }
  0x29   : > { %p1186_p0 = pneg %p1185_p13 }
  0x2a   : > { %1069 = dma.hbm_to_vmem [thread:$0]  (!%p1457_p11), %s1764_s2, 256, %s184_s28, [#allocation7], %s1360_s10, %s1360_s10, %s1361_s11  }
  0x2b   : > { %p1193_p3 = pnand %p1192_p5, %p1186_p0 }
  0x2d   : > { %1196 = shalt.err (!%p1193_p3)
}
  0x2e   : > { %s1765_s3 = sld [smem:[#allocation20_spill]]  ;;  %s1208_s17 = scalar_lea.vmem %s210_s8, 512 }
  0x2f   : > { %p1209_p10 = scmp.ne.s32.totalorder %s210_s8, %s1208_s17  ;;  %p1216_p9 = scmp.lt.s32.totalorder %s210_s8, %s210_s8 }
  0x30   : > { %p1217_p13 = scmp.lt.s32.totalorder %s1208_s17, %s1208_s17 }
  0x31   : > { %p1211_p7 = pnand %p1209_p10, %p1147_p12 }
  0x32   : > { %p1218_p4 = por %p1217_p13, %p1216_p9 }
  0x33   : > { %p1212_p1 = pneg %p1211_p7 }
  0x34   : > { %1072 = dma.hbm_to_vmem [thread:$0]  (!%p1457_p11), %s1765_s3, 256, %s197_s6, [#allocation10], %s1360_s10, %s1360_s10, %s1361_s11  }
  0x35   : > { %p1219_p2 = pnand %p1218_p4, %p1212_p1 }
  0x37   : > { %1222 = shalt.err (!%p1219_p2)
}
  0x38   : > { %s1751_s23 = smov 256   ;;  %s1753_s27 = smov 16  }
  0x39   : > { %s1766_s4 = sld [smem:[#allocation21_spill]]  ;;  %s1491_s6 = sadd.s32 1, %s1355_s21  }
  0x3a   : > { %s29_s7 = ssub.s32 %s1355_s21, %s1491_s6  ;;  %s32_s9 = sadd.s32 1, %s1351_s20 }
  0x3b   : > { %p30_p4 = scmp.eq.s32.totalorder %s29_s7, 0  ;;  %p39_p6 = scmp.ne.s32.totalorder %s1351_s20, %s1347_s19 }
  0x3c   : > { %p40_p12 = scmp.eq.s32.totalorder %s1355_s21, 0  ;;  %p1090_p0 = scmp.lt.s32.totalorder %s1355_s21, 2 }
  0x3d   : > { %s1501_s10 = scalar_select %p30_p4, %s1351_s20, %s32_s9  }
  0x3e   : > { %p41_p5 = por %p40_p12, %p39_p6  ;;  %p1767_p3 = scmp.eq.s32.totalorder %s1429_s22, 1 }
  0x3f   : > { %1075 = dma.hbm_to_vmem [thread:$0]  (!%p1457_p11), %s1766_s4, 512, %s210_s8, [#allocation10], %s1751_s23, %s1751_s23, %s1753_s27  }
  0x40   : > { %p1505_p10 = por %p1767_p3, %p39_p6  ;;  %s223_s11 = sand.u32 1, %s1351_s20  }
  0x41   : > { %s1045_s12 = sshll.u32 %s1355_s21, 10  ;;  %s1511_s8 = sshll.u32 %s223_s11, 6 }
  0x42   : > { %s1768_s29 = scalar_select %p1505_p10, 1, 0 }
  0x43   : > { %s1769_s0 = sld [smem:[#allocation18_spill]]  ;;  %s227_s16 = scalar_lea.vmem [#allocation3], %s1511_s8 }
  0x44   : > { %s234_s17 = sshll.u32 %s227_s16, 4  ;;  %p1519_p11 = pnand %p1090_p0, %p41_p5  ;;  %s1523_s17 = int_to_ptr.vmem [resolvable:$true] %s234_s17 }
  0x45   : > { %s1528_s9 = scalar_lea.hbm %s1744_s1, %s1045_s12  ;;  %s1530_s13 = scalar_lea.sflag [#allocation4], %s223_s11 }
  0x46   : > { %p1225_p1 = pneg %p1519_p11 }
  0x49   : > { %s1516_s15 = scalar_lea.hbm %s1769_s0, %s1045_s12  ;;  %s1228_s27 = scalar_lea.hbm %s1769_s0, 2048 }
  0x4a   : > { %s1223_s14 = scalar_lea.hbm %s1516_s15, 1024  ;;  %p1229_p2 = scmp.lt.s32.totalorder %s1516_s15, %s1769_s0 }
  0x4b   : > { %p1224_p7 = scmp.ne.s32.totalorder %s1516_s15, %s1223_s14  ;;  %p1230_p4 = scmp.lt.s32.totalorder %s1228_s27, %s1223_s14 }
  0x4d   : > { %p1226_p9 = pnand %p1225_p1, %p1224_p7  ;;  %p1231_p6 = por %p1230_p4, %p1229_p2 }
  0x4f   : > { %p1227_p13 = pneg %p1226_p9 }
  0x51   : > { %p1232_p12 = pnand %p1231_p6, %p1227_p13 }
  0x53   : > { %1235 = shalt.err (!%p1232_p12)
}
  0x54   : > { %s1236_s11 = scalar_lea.vmem %s1523_s17, 1024  ;;  %s1364_s23 = smov [#allocation3]  }
  0x55   : > { %p1237_p0 = scmp.ne.s32.totalorder %s1523_s17, %s1236_s11  ;;  %s1241_s12 = sshll.u32 %s1364_s23, 4  ;;  %s1242_s12 = int_to_ptr.vmem [resolvable:$false] %s1241_s12 }
  0x56   : > { %s1243_s30 = scalar_lea.vmem %s1242_s12, 2048  ;;  %p1244_p7 = scmp.lt.s32.totalorder %s1523_s17, %s1242_s12 }
  0x57   : > { %p1239_p5 = pnand %p1237_p0, %p1225_p1  ;;  %p1245_p9 = scmp.lt.s32.totalorder %s1243_s30, %s1236_s11 }
  0x59   : > { %p1240_p3 = pneg %p1239_p5  ;;  %p1246_p10 = por %p1245_p9, %p1244_p7 }
  0x5b   : > { %p1247_p2 = pnand %p1246_p10, %p1240_p3 }
  0x5d   : > { %1250 = shalt.err (!%p1247_p2)
}
  0x5e   : > { %s1771_s2 = smov 16   ;;  %s1772_s3 = smov 256  }
  0x5f   : > { %1079 = dma.hbm_to_vmem [thread:$0]  (!%p1519_p11), %s1516_s15, 1024, %s1523_s17, %s1530_s13, %s1772_s3, %s1772_s3, %s1771_s2  }
  0x60   : > { %s248_s27 = scalar_lea.vmem [#allocation6], %s1511_s8  ;;  %s244_s14 = sand.u32 1, %s1355_s21  }
  0x61   : > { %s255_s7 = sshll.u32 %s248_s27, 4  ;;  %s245_s16 = scalar_lea.sflag [#allocation7], %s244_s14  ;;  %s1562_s7 = int_to_ptr.vmem [resolvable:$true] %s255_s7 }
  0x62   : > { %s1251_s11 = scalar_lea.hbm %s1528_s9, 1024  ;;  %s1256_s30 = scalar_lea.hbm %s1744_s1, 2048 }
  0x63   : > { %p1252_p10 = scmp.ne.s32.totalorder %s1528_s9, %s1251_s11  ;;  %p1257_p6 = scmp.lt.s32.totalorder %s1528_s9, %s1744_s1 }
  0x64   : > { %p1258_p12 = scmp.lt.s32.totalorder %s1256_s30, %s1251_s11 }
  0x65   : > { %p1254_p13 = pnand %p1252_p10, %p1225_p1 }
  0x66   : > { %p1259_p0 = por %p1258_p12, %p1257_p6 }
  0x67   : > { %p1255_p4 = pneg %p1254_p13 }
  0x69   : > { %p1260_p5 = pnand %p1259_p0, %p1255_p4 }
  0x6b   : > { %1263 = shalt.err (!%p1260_p5)
}
  0x6c   : > { %s1264_s8 = scalar_lea.vmem %s1562_s7, 1024  ;;  %s1365_s15 = smov [#allocation6]  }
  0x6d   : > { %p1265_p3 = scmp.ne.s32.totalorder %s1562_s7, %s1264_s8  ;;  %s1269_s17 = sshll.u32 %s1365_s15, 4  ;;  %s1270_s17 = int_to_ptr.vmem [resolvable:$false] %s1269_s17 }
  0x6e   : > { %s1271_s13 = scalar_lea.vmem %s1270_s17, 2048  ;;  %p1272_p2 = scmp.lt.s32.totalorder %s1562_s7, %s1270_s17 }
  0x6f   : > { %p1267_p7 = pnand %p1265_p3, %p1225_p1  ;;  %p1273_p10 = scmp.lt.s32.totalorder %s1271_s13, %s1264_s8 }
  0x71   : > { %p1268_p9 = pneg %p1267_p7  ;;  %p1274_p13 = por %p1273_p10, %p1272_p2 }
  0x73   : > { %p1275_p6 = pnand %p1274_p13, %p1268_p9 }
  0x75   : > { %1278 = shalt.err (!%p1275_p6)
}
  0x76   : > { %1082 = dma.hbm_to_vmem [thread:$0]  (!%p1519_p11), %s1528_s9, 1024, %s1562_s7, %s245_s16, %s1772_s3, %s1772_s3, %s1771_s2  }
  0x77   : > { %267 = sbr.rel (%p1448_p8) target bundleno = 656 (0x290), region = 40  ;;  %s1592_s0 = sand.u32 (!%p1448_p8), 1, %s1347_s19  }
  0x78   : > { %s1030_s4 = sshll.u32 (!%p1448_p8), %s1592_s0, 6  ;;  %s270_s27 = scalar_lea.sflag (!%p1448_p8), [#allocation4], %s1592_s0 }
  0x79   : > { %s1596_s14 = scalar_lea.vmem (!%p1448_p8), [#allocation3], %s1030_s4  ;;  %p1773_p1 = scmp.ne.s32.totalorder (!%p1448_p8), %s1760_s24, 0 }
  0x7c   : > { %1322 = dma.done.wait (%p1773_p1), %s270_s27, 1024  }
  0x7d   : > { %1324 = vsyncadd (%p1773_p1), %s270_s27, 4294966272  ;;  %s278_s28 = sand.u32 1, %s1429_s22   ;;  %s1603_s9 = scalar_lea.vmem [#allocation6], %s1030_s4 }
  0x7e   : > { %s279_s26 = scalar_lea.sflag [#allocation7], %s278_s28 }
  0x7f   : > { %1326 = dma.done.wait (%p1773_p1), %s279_s26, 1024  }
  0x80   : > { %1328 = vsyncadd (%p1773_p1), %s279_s26, 4294966272  ;;  %p1774_p8 = scmp.eq.s32.totalorder %s1429_s22, 0 }
  0x82   : > { %1330 = dma.done.wait (%p1774_p8), [#allocation7], 256   ;;  %p1775_p11 = pmov %p1774_p8 }
  0x83   : > { %p1776_p4 = pmov %p1774_p8 }
  0x84   : > { %1332 = vsyncadd (%p1775_p11), [#allocation7], 4294967040 }
  0x85   : > { %1334 = dma.done.wait (%p1776_p4), [#allocation10], 768   ;;  %p1777_p12 = pmov %p1776_p4 }
  0x86   : > { %v1366_v0 = vmov 0.0   ;;  %v345_v1 = vld [vmem:[%s1603_s9 + $0x38] sm:$0xff]  ;;  %v344_v3 = vld [vmem:[%s1603_s9 + $0x30] sm:$0xff]  ;;  %v343_v5 = vld [vmem:[%s1603_s9 + $0x28] sm:$0xff]  ;;  %vm346_vm0 = vcmask 261120   ;;  %vm513_vm1 = vcmask 138240   ;;  %v555_v34 = vlaneseq }
  0x87   : > { %1336 = vsyncadd (%p1777_p12), [#allocation10], 4294966528  ;;  %417 = vmatprep.mubr.f32.mxu0 %v1366_v0  ;;  %500 = vmatprep.mubr.f32.mxu1 %v1366_v0  ;;  %v335_v2 = vld [vmem:[%s1596_s14 + $0x38] sm:$0xff]  ;;  %v334_v4 = vld [vmem:[%s1596_s14 + $0x30] sm:$0xff]  ;;  %514 = vst.msk [vmem:[#allocation2] sm:$0xff] %vm513_vm1, %v1366_v0  ;;  %vm517_vm2 = vcmask 277640  }
  0x88   : > { %377 = vmatprep.subr.mxu0 %v345_v1  ;;  %460 = vmatprep.subr.mxu1 %v335_v2  ;;  %v333_v6 = vld [vmem:[%s1596_s14 + $0x28] sm:$0xff]  ;;  %v342_v7 = vld [vmem:[%s1603_s9 + $0x20] sm:$0xff]  ;;  %v341_v9 = vld [vmem:[%s1603_s9 + $0x18] sm:$0xff]  ;;  %518 = vst.msk [vmem:[#allocation2 + $0x10] sm:$0xff] %vm517_vm2, %v1366_v0  ;;  %s1367_s24 = smov 17   ;;  %vm515_vm3 = vcmask 131072  }
  0x89   : > { %378 = vmatpush1.msra.mxu0 %v344_v3  ;;  %461 = vmatpush1.msra.mxu1 %v334_v4  ;;  %v332_v8 = vld [vmem:[%s1596_s14 + $0x20] sm:$0xff]  ;;  %v331_v10 = vld [vmem:[%s1596_s14 + $0x18] sm:$0xff]  ;;  %v340_v11 = vld [vmem:[%s1603_s9 + $0x10] sm:$0xff]  ;;  %516 = vst.msk [vmem:[#allocation2 + $0x18] sm:$0x1] %vm515_vm3, %v1366_v0  ;;  %vm519_vm4 = vcmask 270472  }
  0x8a   : > { %379 = vmatprep.subr.mxu0 %v343_v5  ;;  %462 = vmatprep.subr.mxu1 %v333_v6  ;;  %v330_v12 = vld [vmem:[%s1596_s14 + $0x10] sm:$0xff]  ;;  %v339_v13 = vld [vmem:[%s1603_s9 + $0x8] sm:$0xff]  ;;  %v338_v15 = vld [vmem:[%s1603_s9] sm:$0xff]  ;;  %520 = vst.msk [vmem:[#allocation2 + $0x28] sm:$0x1] %vm519_vm4, %v1366_v0  ;;  %vm541_vm5 = vcmask 1047688  }
  0x8b   : > { %380 = vmatpush1.msra.mxu0 %v342_v7  ;;  %463 = vmatpush1.msra.mxu1 %v332_v8  ;;  %v329_v14 = vld [vmem:[%s1596_s14 + $0x8] sm:$0xff]  ;;  %v328_v16 = vld [vmem:[%s1596_s14] sm:$0xff]  ;;  %v336_v17 = vld [vmem:[#allocation9] sm:$0xff]  ;;  %vm545_vm6 = vcmask 1040520   ;;  %v1646_v38 = vshrl.u32 %v555_v34, 7  ;;  %s1368_s2 = smov 127  }
  0x8c   : > { %381 = vmatprep.subr.mxu0 %v341_v9  ;;  %464 = vmatprep.subr.mxu1 %v331_v10  ;;  %v326_v18 = vld [vmem:[#allocation8] sm:$0xff]  ;;  %v337_v19 = vld [vmem:[#allocation9 + $0x8] sm:$0x1]  ;;  %v327_v20 = vld [vmem:[#allocation8 + $0x8] sm:$0x1]  ;;  %s1369_s3 = smov 126  }
  0x8d   : > { %382 = vmatpush1.msra.mxu0 %v340_v11  ;;  %465 = vmatpush1.msra.mxu1 %v330_v12  ;;  %v1651_v41 = vsub.s32 1, %v1646_v38  ;;  %v1654_v42 = vsub.s32 0, %v1646_v38  ;;  %v588_v46 = vsub.s32 2, %v1646_v38  ;;  %s1370_s7 = smov 112   ;;  %s1371_s16 = smov 111   ;;  %vm626_vm7 = vcmask 1031168  }
  0x8e   : > { %383 = vmatprep.subr.mxu0 %v339_v13  ;;  %466 = vmatprep.subr.mxu1 %v329_v14  ;;  %s1372_s11 = smov 110   ;;  %s1373_s23 = smov 96   ;;  %vm596_vm8 = vcmask 1039360   ;;  %vm662_vm9 = vcmask 916480   ;;  %vm698_vm10 = vcmask 908288   ;;  %vm734_vm11 = vcmask 900096  }
  0x8f   : > { %384 = vmatpush1.msra.mxu0 %v338_v15  ;;  %467 = vmatpush1.msra.mxu1 %v328_v16  ;;  %s1374_s12 = smov 95   ;;  %s1375_s30 = smov 94   ;;  %vm770_vm12 = vcmask 785408   ;;  %vm806_vm13 = vcmask 777216   ;;  %vm842_vm14 = vcmask 769024   ;;  %vm878_vm15 = vcmp.lt.s32.totalorder %v555_v34, 256 }
  0x90   : > { %1036 = vmatmul.mubr.msk.f32.vlgmr.msra.gmra.mxu0 %vm346_vm0, %v336_v17  ;;  %1038 = vmatmul.mubr.msk.f32.vlgmr.msra.gmra.mxu1 %vm346_vm0, %v326_v18  ;;  %s1035_s8 = sshll.u32 %s1592_s0, 1  ;;  %s1047_s15 = sshll.u32 %s1429_s22, 5 }
  0x91   : > { %423 = vmatprep.mubr.f32.mxu0 %v1366_v0  ;;  %506 = vmatprep.mubr.f32.mxu1 %v1366_v0  ;;  %s325_s17 = scalar_lea.vmem [#allocation12], %s1035_s8  ;;  %s894_s14 = scalar_lea.hbm %s1748_s5, %s1047_s15 }
  0x92   : > { %s896_s13 = sshll.u32 %s325_s17, 4  ;;  %s882_s28 = scalar_lea.sflag [#allocation5], %s1592_s0  ;;  %s897_s13 = int_to_ptr.vmem [resolvable:$true] %s896_s13 }
  0x93   : > { %s1279_s26 = scalar_lea.vmem %s897_s13, 32  ;;  %p1778_p5 = scmp.ne.s32.totalorder %s1768_s29, 0 }
  0x94   : > { %1037 = vmatmul.mubr.msk.f32.gmra.mxu0 %vm346_vm0, %v337_v19  ;;  %1039 = vmatmul.mubr.msk.f32.gmra.mxu1 %vm346_vm0, %v327_v20  ;;  %p1280_p0 = scmp.ne.s32.totalorder %s897_s13, %s1279_s26  ;;  %s1377_s9 = smov [#allocation12]  }
  0x95   : > { %s1283_s22 = sshll.u32 %s1377_s9, 4  ;;  %s1284_s22 = int_to_ptr.vmem [resolvable:$false] %s1283_s22 }
  0x96   : > { %p1281_p3 = pnand %p1280_p0, %p1778_p5  ;;  %p1286_p9 = scmp.lt.s32.totalorder %s897_s13, %s1284_s22 }
  0x98   : > { %p1282_p7 = pneg %p1281_p3 }
 0x150   : > { %v419_v21 = vpop.f32.mrf.mxu0  ;;  %v502_v22 = vpop.f32.mrf.mxu1 }
 0x151   : > { %v503_v23 = vadd.f32 %v502_v22, %v419_v21 }
 0x152   : > { %v421_v24 = vpop.f32.mrf.mxu0  ;;  %v504_v25 = vpop.f32.mrf.mxu1 }
 0x153   : > { %525 = vrot.lane.b32.xlu0 %v503_v23, %s1367_s24  ;;  %v505_v28 = vadd.f32 %v504_v25, %v421_v24 }
 0x154   : > { %v425_v26 = vpop.f32.mrf.mxu0  ;;  %v508_v27 = vpop.f32.mrf.mxu1 }
 0x155   : > { %v509_v29 = vadd.f32 %v508_v27, %v425_v26  ;;  %v1674_v26 = vld [vmem:[#allocation11] sm:$0xff] }
 0x156   : > { %v427_v30 = vpop.f32.mrf.mxu0  ;;  %v510_v31 = vpop.f32.mrf.mxu1 }
 0x157   : > { %527 = vrot.lane.b32.xlu0 %v505_v28, %s1367_s24  ;;  %529 = vrot.lane.b32.xlu1 %v509_v29, %s1367_s24  ;;  %v511_v32 = vadd.f32 %v510_v31, %v427_v30  ;;  %v1677_v28 = vld [vmem:[#allocation11 + $0x8] sm:$0xff] }
 0x15b   : > { %531 = vrot.lane.b32.xlu1 %v511_v32, %s1367_s24  ;;  %s1285_s24 = scalar_lea.vmem %s1284_s22, 64 }
 0x15c   : > { %p1287_p2 = scmp.lt.s32.totalorder %s1285_s24, %s1279_s26 }
 0x15e   : > { %p1288_p10 = por %p1287_p2, %p1286_p9 }
 0x160   : > { %p1289_p13 = pnand %p1288_p10, %p1282_p7 }
 0x1c5   : > { %v526_v33 = vpop.permute.xlu0 %525 }
 0x1c6   : > { %542 = vst.msk [vmem:[#allocation2] sm:$0xff] %vm541_vm5, %v526_v33 }
 0x1c9   : > { %v528_v35 = vpop.permute.xlu0 %527  ;;  %v530_v36 = vpop.permute.xlu1 %529 }
 0x1ca   : > { %v533_v37 = vsel %vm513_vm1, %v526_v33, %v528_v35  ;;  %544 = vst.msk [vmem:[#allocation2 + $0x10] sm:$0xff] %vm513_vm1, %v528_v35 }
 0x1cb   : > { %546 = vst.msk [vmem:[#allocation2 + $0x18] sm:$0x1] %vm545_vm6, %v530_v36  ;;  %543 = vst [vmem:[#allocation2 + $0x8] sm:$0xff] %v533_v37 }
 0x1cd   : > { %v532_v39 = vpop.permute.xlu1 %531 }
 0x1ce   : > { %v534_v40 = vsel %vm513_vm1, %v530_v36, %v532_v39  ;;  %548 = vst.msk [vmem:[#allocation2 + $0x28] sm:$0x1] %vm515_vm3, %v532_v39 }
 0x1cf   : > { %547 = vst [vmem:[#allocation2 + $0x20] sm:$0x1] %v534_v40 }
 0x1d2   : > { %v576_v43 = vld [vmem:[#allocation2 + $0x1] ss:$8 sm:$0x7]  ;;  %v606_v47 = vld [vmem:[#allocation2 + $0x2] ss:$8 sm:$0x7] }
 0x1d3   : > { %v585_v44 = vrot.slane %v576_v43, %v1651_v41  ;;  %v581_v45 = vrot.slane %v576_v43, %v1654_v42  ;;  %v611_v48 = vrot.slane %v606_v47, %v1654_v42  ;;  %v589_v49 = vrot.slane %v576_v43, %v588_v46  ;;  %v642_v52 = vld [vmem:[#allocation2 + $0x3] ss:$8 sm:$0x7]  ;;  %v678_v55 = vld [vmem:[#allocation2 + $0x4] ss:$8 sm:$0x7] }
 0x1d4   : > { %v619_v50 = vrot.slane %v606_v47, %v588_v46  ;;  %v615_v51 = vrot.slane %v606_v47, %v1651_v41  ;;  %v651_v53 = vrot.slane %v642_v52, %v1651_v41  ;;  %v647_v54 = vrot.slane %v642_v52, %v1654_v42  ;;  %v714_v60 = vld [vmem:[#allocation2 + $0x5] ss:$8 sm:$0x7]  ;;  %v750_v63 = vld [vmem:[#allocation2 + $0x6] ss:$8 sm:$0x7] }
 0x1d5   : > { %592 = vrot.lane.b32.xlu1 %v585_v44, %s1368_s2  ;;  %590 = vrot.lane.b32.xlu0 %v581_v45, %s1368_s2  ;;  %v683_v56 = vrot.slane %v678_v55, %v1654_v42  ;;  %v655_v57 = vrot.slane %v642_v52, %v588_v46  ;;  %v691_v58 = vrot.slane %v678_v55, %v588_v46  ;;  %v786_v4 = vld [vmem:[#allocation2 + $0x7] ss:$8 sm:$0x7]  ;;  %v553_v22 = vld [vmem:[#allocation2] ss:$8 sm:$0x3] }
 0x1d6   : > { %v687_v59 = vrot.slane %v678_v55, %v1651_v41  ;;  %v723_v61 = vrot.slane %v714_v60, %v1651_v41  ;;  %v719_v62 = vrot.slane %v714_v60, %v1654_v42  ;;  %v755_v0 = vrot.slane %v750_v63, %v1654_v42  ;;  %v822_v7 = vld [vmem:[#allocation2 + $0x18] ss:$8 sm:$0x7] }
 0x1d7   : > { %v727_v1 = vrot.slane %v714_v60, %v588_v46  ;;  %v763_v2 = vrot.slane %v750_v63, %v588_v46  ;;  %v759_v3 = vrot.slane %v750_v63, %v1651_v41  ;;  %v795_v5 = vrot.slane %v786_v4, %v1651_v41  ;;  %v1682_v45 = vld [vmem:[#allocation11 + $0x10] sm:$0x3]  ;;  %v552_v52 = vld [vmem:[#allocation11 + $0x18] sm:$0x3] }
 0x1d8   : > { %v791_v6 = vrot.slane %v786_v4, %v1654_v42  ;;  %v827_v8 = vrot.slane %v822_v7, %v1654_v42  ;;  %v799_v9 = vrot.slane %v786_v4, %v588_v46  ;;  %v835_v10 = vrot.slane %v822_v7, %v588_v46 }
 0x1d9   : > { %620 = vrot.lane.b32.xlu1 %v611_v48, %s1369_s3  ;;  %594 = vrot.lane.b32.xlu0 %v589_v49, %s1368_s2  ;;  %v831_v11 = vrot.slane %v822_v7, %v1651_v41  ;;  %v558_v25 = vrot.slane %v553_v22, %v1654_v42  ;;  %v562_v27 = vrot.slane %v553_v22, %v1651_v41 }
 0x1db   : > { %v565_v31 = vmul.f32 %v558_v25, %v1674_v26  ;;  %v566_v33 = vmul.f32 %v562_v27, %v1677_v28  ;;  %v1376_v27 = vmov 1966171168  }
 0x1dd   : > { %624 = vrot.lane.b32.xlu1 %v619_v50, %s1369_s3  ;;  %622 = vrot.lane.b32.xlu0 %v615_v51, %s1369_s3  ;;  %v569_v42 = vrot.slane %v565_v31, 7  ;;  %v570_v48 = vrot.slane %v566_v33, 7 }
 0x1e1   : > { %658 = vrot.lane.b32.xlu1 %v651_v53, %s1370_s7  ;;  %656 = vrot.lane.b32.xlu0 %v647_v54, %s1370_s7 }
 0x1e5   : > { %692 = vrot.lane.b32.xlu1 %v683_v56, %s1371_s16  ;;  %660 = vrot.lane.b32.xlu0 %v655_v57, %s1370_s7  ;;  %v573_v57 = vadd.f32 %v569_v42, %v1682_v45 }
 0x1e9   : > { %696 = vrot.lane.b32.xlu1 %v691_v58, %s1371_s16  ;;  %694 = vrot.lane.b32.xlu0 %v687_v59, %s1371_s16 }
 0x1ed   : > { %730 = vrot.lane.b32.xlu1 %v723_v61, %s1372_s11  ;;  %728 = vrot.lane.b32.xlu0 %v719_v62, %s1372_s11 }
 0x1f1   : > { %764 = vrot.lane.b32.xlu1 %v755_v0, %s1373_s23  ;;  %732 = vrot.lane.b32.xlu0 %v727_v1, %s1372_s11  ;;  %v574_v0 = vadd.f32 %v570_v48, %v552_v52 }
 0x1f5   : > { %768 = vrot.lane.b32.xlu1 %v763_v2, %s1373_s23  ;;  %766 = vrot.lane.b32.xlu0 %v759_v3, %s1373_s23 }
 0x1f9   : > { %802 = vrot.lane.b32.xlu1 %v795_v5, %s1374_s12  ;;  %800 = vrot.lane.b32.xlu0 %v791_v6, %s1374_s12 }
 0x1fd   : > { %836 = vrot.lane.b32.xlu1 %v827_v8, %s1375_s30  ;;  %804 = vrot.lane.b32.xlu0 %v799_v9, %s1374_s12 }
 0x201   : > { %840 = vrot.lane.b32.xlu1 %v835_v10, %s1375_s30  ;;  %838 = vrot.lane.b32.xlu0 %v831_v11, %s1375_s30 }
 0x247   : > { %v593_v12 = vpop.permute.xlu1 %592  ;;  %v591_v13 = vpop.permute.xlu0 %590 }
 0x248   : > { %v597_v36 = vsel %vm596_vm8, %v591_v13, %v593_v12 }
 0x249   : > { %v601_v49 = vmul.f32 %v597_v36, %v1674_v26 }
 0x24b   : > { %v621_v14 = vpop.permute.xlu1 %620  ;;  %v595_v15 = vpop.permute.xlu0 %594  ;;  %v603_v4 = vadd.f32 %v601_v49, %v573_v57 }
 0x24c   : > { %v598_v41 = vsel %vm596_vm8, %v593_v12, %v595_v15 }
 0x24d   : > { %v602_v53 = vmul.f32 %v598_v41, %v1677_v28 }
 0x24f   : > { %v625_v16 = vpop.permute.xlu1 %624  ;;  %v623_v17 = vpop.permute.xlu0 %622  ;;  %v604_v10 = vadd.f32 %v602_v53, %v574_v0 }
 0x250   : > { %v627_v32 = vsel %vm626_vm7, %v621_v14, %v623_v17  ;;  %v628_v35 = vsel %vm626_vm7, %v623_v17, %v625_v16 }
 0x251   : > { %v631_v43 = vmul.f32 %v627_v32, %v1674_v26  ;;  %v632_v46 = vmul.f32 %v628_v35, %v1677_v28 }
 0x253   : > { %v659_v18 = vpop.permute.xlu1 %658  ;;  %v657_v19 = vpop.permute.xlu0 %656  ;;  %v635_v58 = vrot.slane %v631_v43, 1  ;;  %v636_v62 = vrot.slane %v632_v46, 1 }
 0x254   : > { %v663_v37 = vsel %vm662_vm9, %v657_v19, %v659_v18 }
 0x255   : > { %v667_v50 = vmul.f32 %v663_v37, %v1674_v26  ;;  %v639_v13 = vadd.f32 %v635_v58, %v603_v4  ;;  %v640_v17 = vadd.f32 %v636_v62, %v604_v10 }
 0x257   : > { %v693_v20 = vpop.permute.xlu1 %692  ;;  %v661_v21 = vpop.permute.xlu0 %660  ;;  %v671_v1 = vrot.slane %v667_v50, 2 }
 0x258   : > { %v664_v44 = vsel %vm662_vm9, %v659_v18, %v661_v21 }
 0x259   : > { %v668_v54 = vmul.f32 %v664_v44, %v1677_v28  ;;  %v675_v18 = vadd.f32 %v671_v1, %v639_v13 }
 0x25b   : > { %v697_v23 = vpop.permute.xlu1 %696  ;;  %v695_v24 = vpop.permute.xlu0 %694  ;;  %v672_v5 = vrot.slane %v668_v54, 2 }
 0x25c   : > { %v699_v47 = vsel %vm698_vm10, %v693_v20, %v695_v24  ;;  %v700_v51 = vsel %vm698_vm10, %v695_v24, %v697_v23 }
 0x25d   : > { %v703_v59 = vmul.f32 %v699_v47, %v1674_v26  ;;  %v704_v63 = vmul.f32 %v700_v51, %v1677_v28  ;;  %v676_v24 = vadd.f32 %v672_v5, %v640_v17 }
 0x25f   : > { %v731_v29 = vpop.permute.xlu1 %730  ;;  %v729_v30 = vpop.permute.xlu0 %728  ;;  %v707_v11 = vrot.slane %v703_v59, 3  ;;  %v708_v14 = vrot.slane %v704_v63, 3 }
 0x260   : > { %v735_v60 = vsel %vm734_vm11, %v729_v30, %v731_v29 }
 0x261   : > { %v739_v6 = vmul.f32 %v735_v60, %v1674_v26  ;;  %v711_v30 = vadd.f32 %v707_v11, %v675_v18  ;;  %v712_v35 = vadd.f32 %v708_v14, %v676_v24 }
 0x263   : > { %v765_v39 = vpop.permute.xlu1 %764  ;;  %v733_v40 = vpop.permute.xlu0 %732  ;;  %v743_v19 = vrot.slane %v739_v6, 4 }
 0x264   : > { %v736_v61 = vsel %vm734_vm11, %v731_v29, %v733_v40  ;;  %v861_v29 = vunpack.c.l.s4 %v1376_v27 }
 0x265   : > { %v740_v7 = vmul.f32 %v736_v61, %v1677_v28 }
 0x266   : > { %v862_v41 = vunpack.c.0.s8 %v861_v29 }
 0x267   : > { %v769_v55 = vpop.permute.xlu1 %768  ;;  %v767_v56 = vpop.permute.xlu0 %766  ;;  %v744_v20 = vrot.slane %v740_v7, 4 }
 0x268   : > { %v771_v2 = vsel %vm770_vm12, %v765_v39, %v767_v56  ;;  %v772_v3 = vsel %vm770_vm12, %v767_v56, %v769_v55  ;;  %v865_v54 = vsub.s32 %v862_v41, %v1646_v38 }
 0x269   : > { %v775_v15 = vmul.f32 %v771_v2, %v1674_v26  ;;  %v776_v16 = vmul.f32 %v772_v3, %v1677_v28  ;;  %v748_v42 = vadd.f32 %v744_v20, %v712_v35 }
 0x26b   : > { %v803_v8 = vpop.permute.xlu1 %802  ;;  %v801_v9 = vpop.permute.xlu0 %800  ;;  %v779_v31 = vrot.slane %v775_v15, 5  ;;  %v780_v32 = vrot.slane %v776_v16, 5 }
 0x26c   : > { %v807_v12 = vsel %vm806_vm13, %v801_v9, %v803_v8 }
 0x26d   : > { %v811_v21 = vmul.f32 %v807_v12, %v1674_v26  ;;  %v747_v26 = vadd.f32 %v743_v19, %v711_v30  ;;  %v784_v47 = vadd.f32 %v780_v32, %v748_v42 }
 0x26f   : > { %v837_v22 = vpop.permute.xlu1 %836  ;;  %v805_v23 = vpop.permute.xlu0 %804  ;;  %v815_v36 = vrot.slane %v811_v21, 6  ;;  %v783_v46 = vadd.f32 %v779_v31, %v747_v26 }
 0x270   : > { %v808_v25 = vsel %vm806_vm13, %v803_v8, %v805_v23 }
 0x271   : > { %v812_v33 = vmul.f32 %v808_v25, %v1677_v28  ;;  %v819_v28 = vadd.f32 %v815_v36, %v783_v46 }
 0x273   : > { %v816_v37 = vrot.slane %v812_v33, 6  ;;  %v841_v39 = vpop.permute.xlu1 %840  ;;  %v839_v40 = vpop.permute.xlu0 %838 }
 0x274   : > { %v843_v43 = vsel %vm842_vm14, %v837_v22, %v839_v40  ;;  %v844_v44 = vsel %vm842_vm14, %v839_v40, %v841_v39 }
 0x275   : > { %v847_v48 = vmul.f32 %v843_v43, %v1682_v45  ;;  %v848_v49 = vmul.f32 %v844_v44, %v552_v52  ;;  %v820_v50 = vadd.f32 %v816_v37, %v784_v47 }
 0x277   : > { %v851_v51 = vrot.slane %v847_v48, 7  ;;  %v852_v53 = vrot.slane %v848_v49, 7 }
 0x279   : > { %v855_v55 = vadd.f32 %v851_v51, %v819_v28  ;;  %v856_v56 = vadd.f32 %v852_v53, %v820_v50 }
 0x27b   : > { %v859_v57 = vcombine.low %v855_v55, %v856_v56 }
 0x27d   : > { %v866_v58 = vrot.slane %v859_v57, %v865_v54 }
 0x27f   : > { %v867_v59 = vcombine.high %v866_v58, %v866_v58 }
 0x281   : > { %v874_v45 = vrot.slane %v867_v59, %v865_v54 }
 0x283   : > { %880 = vst.msk [vmem:[%s325_s17] sm:$0x3] %vm878_vm15, %v874_v45 }
 0x284   : > { %1292 = shalt.err (!%p1289_p13)
}
 0x285   : > { %s1293_s2 = scalar_lea.hbm %s894_s14, 32  ;;  %s1297_s7 = scalar_lea.hbm %s1748_s5, 64 }
 0x286   : > { %p1294_p6 = scmp.ne.s32.totalorder %s894_s14, %s1293_s2  ;;  %p1298_p11 = scmp.lt.s32.totalorder %s894_s14, %s1748_s5 }
 0x287   : > { %p1299_p4 = scmp.lt.s32.totalorder %s1297_s7, %s1293_s2 }
 0x288   : > { %p1295_p1 = pnand %p1294_p6, %p1778_p5 }
 0x289   : > { %p1300_p12 = por %p1299_p4, %p1298_p11 }
 0x28a   : > { %p1296_p8 = pneg %p1295_p1 }
 0x28c   : > { %p1301_p0 = pnand %p1300_p12, %p1296_p8 }
 0x28e   : > { %1304 = shalt.err (!%p1301_p0)
}
 0x28f   : > { %1064 = dma.vmem_to_hbm [thread:$0]  (%p1778_p5), %s897_s13, 32, %s894_s14, %s882_s28  }
 0x290 PF: > { %s908_s23 = sand.u32 1, %s1343_s18   ;;  %p1779_p3 = scmp.ne.s32.totalorder %s1761_s25, 0 }
 0x291   : > { %p1780_p7 = scmp.ge.s32.totalorder %s1355_s21, 2  ;;  %s909_s12 = scalar_lea.sflag [#allocation5], %s908_s23 }
 0x293   : > { %p1084_p9 = pnand %p1780_p7, %p1779_p3 }
 0x295   : > { %p1085_p2 = pneg %p1084_p9 }
 0x297   : > { %1338 = dma.done.wait (%p1085_p2), %s909_s12, 32  }
 0x298   : > { %1340 = vsyncadd (%p1085_p2), %s909_s12, 4294967264  ;;  %p22_p10 = scmp.ge.s32.totalorder %s1491_s6, 4   ;;  %s1781_s18 = smov %s1347_s19 }
 0x299   : > { %s1782_s19 = smov %s1351_s20  ;;  %s1783_s20 = smov %s1501_s10 }
 0x29a   : > { %s1784_s21 = smov %s1491_s6  ;;  %24 = sbr.rel (!%p22_p10) target bundleno = 13 (0xd), region = 118 }
 0x29f   :  { %914 = vsyncpa [#allocation4], 1 }
 0x2a0   :  { %916 = vsyncpa [#allocation4 + $0x1], 1 }
 0x2a1   :  { %917 = vsyncpa [#allocation7], 1 }
 0x2a2   :  { %919 = vsyncpa [#allocation7 + $0x1], 1 }
 0x2a3   :  { %920 = vsyncpa [#allocation10], 1 }
 0x2a4   :  { %921 = vsyncpa [#allocation5], 1 }
 0x2a5   :  { %923 = vsyncpa [#allocation5 + $0x1], 1 }

</bundles_post_ra>
